<compile_context>
chip_gen: v5e
topology: v5e:2x2
jax: 0.10.0
libtpu: 0.0.40
codegen_flags: <defaults>
</compile_context>

<pallas_src>
import jax
import jax.numpy as jnp
from jax.experimental import pallas as pl
from jax.experimental.pallas import tpu as pltpu


# ---------------------------------------------------------------------------
# helpers
# ---------------------------------------------------------------------------
def _round_up(x, m):
    return ((x + m - 1) // m) * m


def _default_tm():
    """Generation-appropriate row tile: 128 on v5e, 256 on v6e / v7x."""
    try:
        kind = jax.devices()[0].device_kind.lower()
        if "v5 lite" in kind or "v5lite" in kind or "v5e" in kind:
            return 128
    except Exception:
        pass
    return 256


# ---------------------------------------------------------------------------
# Pallas kernel: tiled dense projection  y[i, :] = x[i, :] @ W + b
# ---------------------------------------------------------------------------
def _dense_kernel(x_ref, w_ref, b_ref, o_ref):
    # x_ref: (tm, Kp) bf16   w_ref: (Kp, Np) bf16   b_ref: (1, Np) f32
    # o_ref: (tm, Np) f32
    # bf16 operands -> single-pass MXU, f32 accumulation; bias added in the
    # f32 epilogue via implicit (1, Np) -> (tm, Np) broadcast (single VPU add).
    acc = jnp.dot(x_ref[...], w_ref[...], preferred_element_type=jnp.float32)
    o_ref[...] = (acc + b_ref[...]).astype(o_ref.dtype)


def pallas_dense(x, w, b, *, tm=None, compute_dtype=jnp.bfloat16,
                 out_dtype=jnp.float32):
    """y = x @ w + b with x: (M, K), w: (K, N), b: (N,).

    Operands are cast to bf16 (f32 accumulate).  M is padded to a multiple of
    the row tile, K and N are zero-padded to multiples of 128 so that both the
    x loads and the output stores are lane-dense.  Zero-padding K is exact
    (padded rows of w contribute nothing); padding is sliced off on return.
    """
    M, K = x.shape
    K2, N = w.shape
    assert K == K2

    if tm is None:
        tm = _default_tm()
    # Clamp the tile for tiny inputs (keep it a multiple of 16 for bf16
    # sublane packing) so a 16-row demo problem is not padded to 256 rows.
    tm = min(tm, _round_up(M, 16))

    Mp = _round_up(M, tm)
    Kp = _round_up(K, 128)
    Np = _round_up(N, 128)

    x_p = jnp.zeros((Mp, Kp), compute_dtype).at[:M, :K].set(
        x.astype(compute_dtype))
    w_p = jnp.zeros((Kp, Np), compute_dtype).at[:K, :N].set(
        w.astype(compute_dtype))
    b_p = jnp.zeros((1, Np), jnp.float32).at[0, :N].set(
        b.astype(jnp.float32))

    grid = (Mp // tm,)
    out = pl.pallas_call(
        _dense_kernel,
        out_shape=jax.ShapeDtypeStruct((Mp, Np), out_dtype),
        grid_spec=pltpu.PrefetchScalarGridSpec(
            num_scalar_prefetch=0,
            grid=grid,
            in_specs=[
                pl.BlockSpec((tm, Kp), lambda i: (i, 0)),   # row tile of x
                pl.BlockSpec((Kp, Np), lambda i: (0, 0)),   # resident weight
                pl.BlockSpec((1, Np), lambda i: (0, 0)),    # resident bias
            ],
            out_specs=pl.BlockSpec((tm, Np), lambda i: (i, 0)),
        ),
        # Parallel M axis: lets Mosaic shard row tiles across the two
        # TensorCores on v7x; harmless elsewhere.
        compiler_params=pltpu.CompilerParams(
            dimension_semantics=("parallel",)),
    )(x_p, w_p, b_p)

    return out[:M, :N]


# ---------------------------------------------------------------------------
# LMEmbedding module (JAX/Pallas)
# ---------------------------------------------------------------------------
class LMEmbeddingPallas:
    def __init__(self, lm_emb_dim, elmo_output_dim, vocab_size, key,
                 num_output_representations=1, dropout=0.1):
        self.num_output_representations = num_output_representations
        self.lm_emb_dim = lm_emb_dim
        self.elmo_output_dim = elmo_output_dim
        self.use_dense = (lm_emb_dim != elmo_output_dim)

        k_emb, k_w, k_b = jax.random.split(key, 3)

        # TODO(synk): real ELMo (char-CNN + highway + 2x biLSTM, pretrained
        # weights from HDF5) has no in-script Pallas equivalent; a frozen
        # deterministic embedding table stands in for its output here.
        self.elmo_table = jax.random.normal(
            k_emb, (vocab_size, elmo_output_dim), dtype=jnp.float32)

        if self.use_dense:
            # nn.Linear(elmo_output_dim, lm_emb_dim): stored pre-transposed (K, N)
            bound = 1.0 / (elmo_output_dim ** 0.5)
            self.dense_w = jax.random.uniform(
                k_w, (elmo_output_dim, lm_emb_dim),
                minval=-bound, maxval=bound, dtype=jnp.float32)
            self.dense_b = jax.random.uniform(
                k_b, (lm_emb_dim,), minval=-bound, maxval=bound,
                dtype=jnp.float32)

        # dropout is identity in eval mode (fine_tune=False / inference).

    def __call__(self, token_ids):
        """token_ids: (batch, seq) int32 -> (batch, seq, lm_emb_dim) f32."""
        B, S = token_ids.shape
        # "ELMo" representation (stand-in): plain-JAX gather glue.
        # TODO(synk): the gather could be fused into the pallas_call via
        # scalar-prefetched token ids + a manual DMA row gather to avoid the
        # HBM round-trip, but it only stands in for the (untranslatable) ELMo
        # encoder, so it stays as plain-JAX glue here.
        lm_emb = self.elmo_table[token_ids]            # (B, S, elmo_dim)
        if self.num_output_representations == 1:
            pass  # single representation, already selected
        if self.use_dense:
            x2d = lm_emb.reshape(B * S, self.elmo_output_dim)
            y2d = pallas_dense(x2d, self.dense_w, self.dense_b)
            lm_emb = y2d.reshape(B, S, self.lm_emb_dim)
        return lm_emb

    def get_emb_dim(self):
        return self.lm_emb_dim


# ---------------------------------------------------------------------------
if __name__ == "__main__":
    key = jax.random.PRNGKey(0)
    k_params, k_ids = jax.random.split(key)

    batch, seq = 2, 8
    vocab_size = 50
    elmo_output_dim = 32   # small stand-in for ELMo's 1024
    lm_emb_dim = 64        # != elmo dim -> use_dense = True

    module = LMEmbeddingPallas(
        lm_emb_dim=lm_emb_dim,
        elmo_output_dim=elmo_output_dim,
        vocab_size=vocab_size,
        key=k_params,
    )

    token_ids = jax.random.randint(
        k_ids, (batch, seq), minval=0, maxval=vocab_size, dtype=jnp.int32)

    out = module(token_ids)
    out = jax.block_until_ready(out)

    # Correctness check against plain-JAX f32 reference of the dense
    # projection (bf16 operands with f32 accumulate -> loosened tolerance).
    ref = module.elmo_table[token_ids] @ module.dense_w + module.dense_b
    assert out.shape == (batch, seq, lm_emb_dim)
    assert jnp.allclose(out, ref, atol=2e-2, rtol=2e-2)

    print("KERNEL_OK")
</pallas_src>

<mosaic_0001>
module attributes {stable_mosaic.version = 11 : i64} {
  func.func @_dense_kernel(%arg0: i32, %arg1: memref<16x128xbf16, #tpu.memory_space<vmem>>, %arg2: memref<128x128xbf16, #tpu.memory_space<vmem>>, %arg3: memref<1x128xf32, #tpu.memory_space<vmem>>, %arg4: memref<16x128xf32, #tpu.memory_space<vmem>>) attributes {dimension_semantics = [#tpu.dimension_semantics<parallel>], iteration_bounds = array<i64: 1>, scalar_prefetch = 0 : i64, scratch_operands = 0 : i64, tpu.core_type = #tpu.core_type<tc>, window_params = [{transform_indices = @transform_0, window_bounds = array<i64: 16, 128>}, {pipeline_mode = #tpu.pipeline_mode<synchronous>, transform_indices = @transform_1, window_bounds = array<i64: 128, 128>}, {pipeline_mode = #tpu.pipeline_mode<synchronous>, transform_indices = @transform_2, window_bounds = array<i64: 1, 128>}, {transform_indices = @transform_3, window_bounds = array<i64: 16, 128>}]} {
    %c0 = arith.constant 0 : index
    %c0_0 = arith.constant 0 : index
    %0 = vector.load %arg1[%c0, %c0_0] : memref<16x128xbf16, #tpu.memory_space<vmem>>, vector<16x128xbf16>
    %c0_1 = arith.constant 0 : index
    %c0_2 = arith.constant 0 : index
    %1 = vector.load %arg2[%c0_1, %c0_2] : memref<128x128xbf16, #tpu.memory_space<vmem>>, vector<128x128xbf16>
    %cst = arith.constant dense<0.000000e+00> : vector<16x128xf32>
    %2 = tpu.matmul %0, %1, %cst {dimension_numbers = #tpu.dot_dimension_numbers<[1], [0], [0], [1], [0, 0, 1, 1], [], []>} : vector<16x128xbf16>, vector<128x128xbf16>, vector<16x128xf32> -> vector<16x128xf32>
    %c0_3 = arith.constant 0 : index
    %c0_4 = arith.constant 0 : index
    %3 = vector.load %arg3[%c0_3, %c0_4] : memref<1x128xf32, #tpu.memory_space<vmem>>, vector<1x128xf32>
    %4 = vector.broadcast %3 : vector<1x128xf32> to vector<16x128xf32>
    %5 = arith.addf %2, %4 : vector<16x128xf32>
    %c0_5 = arith.constant 0 : index
    %c0_6 = arith.constant 0 : index
    %6 = vector.load %arg4[%c0_5, %c0_6] : memref<16x128xf32, #tpu.memory_space<vmem>>, vector<16x128xf32>
    tpu.vector_store %arg4[%c0_5, %c0_6], %5 {strides = array<i32>} : memref<16x128xf32, #tpu.memory_space<vmem>>, vector<16x128xf32>,
    return
  }
  func.func @transform_0(%arg0: i32) -> (i32, i32) {
    %c0_i32 = arith.constant 0 : i32
    %c0_i32_0 = arith.constant 0 : i32
    return %arg0, %c0_i32 : i32, i32
  }
  func.func @transform_1(%arg0: i32) -> (i32, i32) {
    %c0_i32 = arith.constant 0 : i32
    %c0_i32_0 = arith.constant 0 : i32
    %c0_i32_1 = arith.constant 0 : i32
    return %c0_i32, %c0_i32_0 : i32, i32
  }
  func.func @transform_2(%arg0: i32) -> (i32, i32) {
    %c0_i32 = arith.constant 0 : i32
    %c0_i32_0 = arith.constant 0 : i32
    %c0_i32_1 = arith.constant 0 : i32
    return %c0_i32, %c0_i32_0 : i32, i32
  }
  func.func @transform_3(%arg0: i32) -> (i32, i32) {
    %c0_i32 = arith.constant 0 : i32
    %c0_i32_0 = arith.constant 0 : i32
    return %arg0, %c0_i32 : i32, i32
  }
}

</mosaic_0001>

<bundles_post_ra>
// kernel: tpu_custom_call.1
= control target key start
LH: loop header
LB: loop body
LE: loop exit
PB: predicated region body
PF: predicated region fallthrough
CT: control target
= control target key end

     0   :  { %8 = vsyncpa [#allocation3], 0  ;;  %s329_s0 = inlined_call_operand.hbm [shape: bf16[16,128], index: 0, kind: input, shape index: {}]   ;;  %s330_s1 = inlined_call_operand.hbm [shape: bf16[128,128], index: 1, kind: input, shape index: {}]   ;;  %s331_s2 = inlined_call_operand.vmem [shape: f32[1,128], index: 2, kind: input, shape index: {}]   ;;  %s332_s3 = inlined_call_operand.hbm [shape: f32[16,128], index: 3, kind: output, shape index: {}]  }
   0x1   :  { %9 = vsyncpa [#allocation6], 0 }
   0x2   :  { %10 = vsyncpa [#allocation4], 0  ;;  %s15_s14 = sshll.u32 %s329_s0, 4  ;;  %s290_s15 = smov [#allocation2]   ;;  %s16_s14 = int_to_ptr.hbm [resolvable:$true] %s15_s14 }
   0x3   :  { %s17_s16 = sshll.u32 %s290_s15, 4  ;;  %s28_s19 = sshll.u32 %s330_s1, 4  ;;  %s18_s16 = int_to_ptr.vmem [resolvable:$true] %s17_s16  ;;  %s29_s19 = int_to_ptr.hbm [resolvable:$true] %s28_s19 }
   0x4   :  { %s291_s20 = smov 64   ;;  %s292_s21 = smov 4  }
   0x5   :  { %23 = dma.hbm_to_vmem [thread:$0]  %s16_s14, 128, %s18_s16, [#allocation3], %s291_s20, %s291_s20, %s292_s21  }
   0x6   :  { %s293_s22 = smov [#allocation5]  }
   0x7   :  { %s30_s23 = sshll.u32 %s293_s22, 4  ;;  %s31_s23 = int_to_ptr.vmem [resolvable:$true] %s30_s23 }
   0x8   :  { %36 = dma.hbm_to_vmem [thread:$0]  %s29_s19, 1024, %s31_s23, [#allocation6], %s291_s20, %s291_s20, %s292_s21  }
   0x9   :  { %284 = dma.done.wait [#allocation3], 128  }
   0xa   :  { %285 = vsyncadd [#allocation3], 4294967168 }
   0xb   :  { %286 = dma.done.wait [#allocation6], 1024  }
   0xc   :  { %287 = vsyncadd [#allocation6], 4294966272  ;;  %v203_v0 = vld [vmem:[#allocation5 + $0x38] sm:$0xff]  ;;  %v202_v1 = vld [vmem:[#allocation5 + $0x30] sm:$0xff]  ;;  %s294_s24 = smov [#allocation7]   ;;  %s145_s28 = sshll.u32 %s332_s3, 4  ;;  %s146_s28 = int_to_ptr.hbm [resolvable:$true] %s145_s28 }
   0xd   :  { %123 = vmatpush.bf16.msra.mxu0 %v203_v0  ;;  %v201_v2 = vld [vmem:[#allocation5 + $0x28] sm:$0xff]  ;;  %v200_v3 = vld [vmem:[#allocation5 + $0x20] sm:$0xff]  ;;  %v199_v4 = vld [vmem:[#allocation5 + $0x18] sm:$0xff]  ;;  %s143_s25 = sshll.u32 %s294_s24, 4  ;;  %s295_s29 = smov 128   ;;  %s144_s25 = int_to_ptr.vmem [resolvable:$true] %s143_s25 }
   0xe   :  { %v198_v5 = vld [vmem:[#allocation5 + $0x10] sm:$0xff]  ;;  %v197_v6 = vld [vmem:[#allocation5 + $0x8] sm:$0xff]  ;;  %v196_v7 = vld [vmem:[#allocation5] sm:$0xff]  ;;  %s296_s30 = smov 8  }
   0xf   :  { %v195_v8 = vld [vmem:[#allocation2] sm:$0xff] }
  0x10   :  { %v211_v9 = vld [vmem:[%s331_s2] ss:$0 sm:$0xff] }
  0x11   :  { %124 = vmatpush.bf16.msra.mxu0 %v202_v1 }
  0x15   :  { %125 = vmatpush.bf16.msra.mxu0 %v201_v2 }
  0x19   :  { %126 = vmatpush.bf16.msra.mxu0 %v200_v3 }
  0x1d   :  { %127 = vmatpush.bf16.msra.mxu0 %v199_v4 }
  0x21   :  { %128 = vmatpush.bf16.msra.mxu0 %v198_v5 }
  0x25   :  { %129 = vmatpush.bf16.msra.mxu0 %v197_v6 }
  0x29   :  { %130 = vmatpush.bf16.msra.mxu0 %v196_v7 }
  0x2c   :  { %131 = vmatmul.bf16.vlgmr.msra.gmra.mxu0 %v195_v8 }
  0xa9   :  { %v132_v10 = vpop.f32.mrf.mxu0 }
  0xaa   :  { %v133_v11 = vadd.f32 %v211_v9, %v132_v10 }
  0xac   :  { %137 = vst [vmem:[#allocation7] sm:$0xff] %v133_v11 }
  0xb1   :  { %v134_v12 = vpop.f32.mrf.mxu0 }
  0xb2   :  { %v135_v13 = vadd.f32 %v211_v9, %v134_v12 }
  0xb4   :  { %138 = vst [vmem:[#allocation7 + $0x8] sm:$0xff] %v135_v13 }
  0xb5   :  { %151 = dma.vmem_to_hbm [thread:$0]  %s144_s25, 256, %s146_s28, [#allocation4], %s295_s29, %s295_s29, %s296_s30  }
  0xb6   :  { %288 = dma.done.wait [#allocation4], 256  }
  0xb7   :  { %289 = vsyncadd [#allocation4], 4294967040 }
  0xb8   :  { %156 = vsyncpa [#allocation3], 1 }
  0xb9   :  { %157 = vsyncpa [#allocation6], 1 }
  0xba   :  { %158 = vsyncpa [#allocation4], 1 }

</bundles_post_ra>
